<compile_context>
chip_gen: v7x
topology: tpu7x:2x2x1
jax: 0.10.0
libtpu: 0.0.40
codegen_flags: <defaults>
</compile_context>

<pallas_src>
import functools
import math

import jax
import jax.numpy as jnp
from jax import lax
from jax.experimental import pallas as pl
from jax.experimental.pallas import tpu as pltpu

BN_EPS = 1e-5


# ----------------------------------------------------------------------------
# In-kernel helper: 1x1-conv ("FC") + BatchNorm2d (training batch stats) + ReLU
# ----------------------------------------------------------------------------
def _fc_bn(x, w_ref, b_ref, activation):
    y = jnp.dot(x, w_ref[...], preferred_element_type=jnp.float32) + b_ref[...]
    mean = jnp.mean(y, axis=0, keepdims=True)
    var = jnp.mean(jnp.square(y - mean), axis=0, keepdims=True)
    y = (y - mean) * lax.rsqrt(var + BN_EPS)      # gamma=1, beta=0 at init
    if activation:
        y = jnp.maximum(y, 0.0)
    return y


# ----------------------------------------------------------------------------
# Kernel 1: fused SE-branch (FC_se) + TE-branch (one-hot + FC_te)
# ----------------------------------------------------------------------------
def _embed_kernel(se_ref, te_ref,
                  wse1_ref, bse1_ref, wse2_ref, bse2_ref,
                  wte1_ref, bte1_ref, wte2_ref, bte2_ref,
                  se_out_ref, te_out_ref, *, T):
    # --- spatial branch: FC_se over the num_vertex rows ---
    se = _fc_bn(se_ref[...], wse1_ref, bse1_ref, True)
    se_out_ref[...] = _fc_bn(se, wse2_ref, bse2_ref, False)

    # --- temporal branch: build [Mt, 7+T] one-hot in-register, then FC_te ---
    idx = te_ref[...]                               # [Mt, 2] int32 (mod-reduced)
    mt = idx.shape[0]
    classes = lax.broadcasted_iota(jnp.int32, (mt, 7 + T), 1)
    onehot = (jnp.where(classes == idx[:, 0:1], 1.0, 0.0)
              + jnp.where(classes == (7 + idx[:, 1:2]), 1.0, 0.0)).astype(jnp.float32)
    te = _fc_bn(onehot, wte1_ref, bte1_ref, True)
    te_out_ref[...] = _fc_bn(te, wte2_ref, bte2_ref, False)


def st_embedding_branches(params, SE, te_idx, T):
    N, D = SE.shape
    Mt = te_idx.shape[0]
    (wse1, bse1), (wse2, bse2) = params["se1"], params["se2"]
    (wte1, bte1), (wte2, bte2) = params["te1"], params["te2"]

    def full(shape):
        return pl.BlockSpec(shape, lambda i, _s=shape: (0,) * len(_s))

    kern = functools.partial(_embed_kernel, T=T)
    return pl.pallas_call(
        kern,
        out_shape=(jax.ShapeDtypeStruct((N, D), jnp.float32),
                   jax.ShapeDtypeStruct((Mt, D), jnp.float32)),
        grid=(1,),
        in_specs=[full((N, D)), full((Mt, 2)),
                  full((D, D)), full((1, D)), full((D, D)), full((1, D)),
                  full((7 + T, D)), full((1, D)), full((D, D)), full((1, D))],
        out_specs=(full((N, D)), full((Mt, D))),
    )(SE, te_idx,
      wse1, bse1.reshape(1, D), wse2, bse2.reshape(1, D),
      wte1, bte1.reshape(1, D), wte2, bte2.reshape(1, D))


# ----------------------------------------------------------------------------
# Kernel 2: tiled broadcast add  out[m, n, :] = te[m, :] + se[n, :]
# ----------------------------------------------------------------------------
def _bcast_add_kernel(te_ref, se_ref, o_ref):
    o_ref[...] = te_ref[...][:, None, :] + se_ref[...][None, :, :]


def _choose_tm(mt, row_bytes, target_bytes=2 << 20):
    """Largest multiple-of-8 divisor of mt fitting the byte budget with >=2 steps."""
    if mt % 8 != 0 or mt < 16:
        return mt
    tm = 8
    for cand in range(8, mt + 1, 8):
        if mt % cand == 0 and cand * row_bytes <= target_bytes and mt // cand >= 2:
            tm = cand
    return tm


def broadcast_add(te_emb, se_emb):
    Mt, D = te_emb.shape
    N, _ = se_emb.shape
    tm = _choose_tm(Mt, N * D * 4)
    return pl.pallas_call(
        _bcast_add_kernel,
        out_shape=jax.ShapeDtypeStruct((Mt, N, D), jnp.float32),
        grid=(Mt // tm,),
        in_specs=[pl.BlockSpec((tm, D), lambda i: (i, 0)),
                  pl.BlockSpec((N, D), lambda i: (0, 0))],
        out_specs=pl.BlockSpec((tm, N, D), lambda i: (i, 0, 0)),
        compiler_params=pltpu.CompilerParams(dimension_semantics=("parallel",)),
    )(te_emb, se_emb)


# ----------------------------------------------------------------------------
# Parameter init (xavier-uniform weights, zero biases — matches the module)
# ----------------------------------------------------------------------------
def init_params(key, D, T=108):
    dims = {"se1": (D, D), "se2": (D, D), "te1": (7 + T, D), "te2": (D, D)}
    params = {}
    keys = jax.random.split(key, len(dims))
    for k_, (name, (cin, cout)) in zip(keys, sorted(dims.items())):
        bound = math.sqrt(6.0 / (cin + cout))
        w = jax.random.uniform(k_, (cin, cout), jnp.float32, -bound, bound)
        params[name] = (w, jnp.zeros((cout,), jnp.float32))
    return params


# ----------------------------------------------------------------------------
# STEmbedding forward
# ----------------------------------------------------------------------------
def st_embedding(params, SE, TE, T=108):
    B, Ts, _ = TE.shape
    N, D = SE.shape
    dow = TE[..., 0].astype(jnp.int32) % 7
    tod = TE[..., 1].astype(jnp.int32) % 108      # PyTorch hard-codes 108 here
    te_idx = jnp.stack([dow, tod], axis=-1).reshape(B * Ts, 2)
    se_emb, te_emb = st_embedding_branches(params, SE, te_idx, T)
    out = broadcast_add(te_emb, se_emb)
    return out.reshape(B, Ts, N, D)


# ----------------------------------------------------------------------------
# Pure-JAX reference (for a runtime sanity check)
# ----------------------------------------------------------------------------
def _ref(params, SE, TE, T=108):
    def fc_bn(x, w, b, act):
        y = jnp.dot(x, w, precision=lax.Precision.HIGHEST) + b
        mean = jnp.mean(y, axis=0, keepdims=True)
        var = jnp.mean(jnp.square(y - mean), axis=0, keepdims=True)
        y = (y - mean) / jnp.sqrt(var + BN_EPS)
        return jnp.maximum(y, 0.0) if act else y

    N, D = SE.shape
    B, Ts, _ = TE.shape
    se = fc_bn(SE, *params["se1"], True)
    se = fc_bn(se, *params["se2"], False)
    dow = jax.nn.one_hot(TE[..., 0].astype(jnp.int32) % 7, 7, dtype=jnp.float32)
    tod = jax.nn.one_hot(TE[..., 1].astype(jnp.int32) % 108, T, dtype=jnp.float32)
    te = jnp.concatenate([dow, tod], -1).reshape(B * Ts, 7 + T)
    te = fc_bn(te, *params["te1"], True)
    te = fc_bn(te, *params["te2"], False)
    return se[None, None] + te.reshape(B, Ts, 1, D)


if __name__ == "__main__":
    B, Ts, N = 2, 8, 16        # batch, num_his + num_pred, num_vertex
    D, T = 64, 108             # model dim, steps per day

    key = jax.random.PRNGKey(0)
    kse, kd, kt, kp = jax.random.split(key, 4)
    SE = jax.random.normal(kse, (N, D), jnp.float32)
    dow = jax.random.randint(kd, (B, Ts), 0, 21)    # exercises the % 7
    tod = jax.random.randint(kt, (B, Ts), 0, 400)   # exercises the % 108
    TE = jnp.stack([dow, tod], axis=-1).astype(jnp.int32)
    params = init_params(kp, D, T)

    out = st_embedding(params, SE, TE, T)
    out = jax.block_until_ready(out)
    assert out.shape == (B, Ts, N, D), out.shape
    assert bool(jnp.all(jnp.isfinite(out)))

    ref = _ref(params, SE, TE, T)
    err = float(jnp.max(jnp.abs(out - ref)))
    assert jnp.allclose(out, ref, atol=3e-2, rtol=3e-2), err
    print("KERNEL_OK")
</pallas_src>

<mosaic_0001>
module attributes {stable_mosaic.version = 11 : i64} {
  func.func @_embed_kernel(%arg0: i32, %arg1: memref<16x64xf32, #tpu.memory_space<vmem>>, %arg2: memref<16x2xi32, #tpu.memory_space<vmem>>, %arg3: memref<64x64xf32, #tpu.memory_space<vmem>>, %arg4: memref<1x64xf32, #tpu.memory_space<vmem>>, %arg5: memref<64x64xf32, #tpu.memory_space<vmem>>, %arg6: memref<1x64xf32, #tpu.memory_space<vmem>>, %arg7: memref<115x64xf32, #tpu.memory_space<vmem>>, %arg8: memref<1x64xf32, #tpu.memory_space<vmem>>, %arg9: memref<64x64xf32, #tpu.memory_space<vmem>>, %arg10: memref<1x64xf32, #tpu.memory_space<vmem>>, %arg11: memref<16x64xf32, #tpu.memory_space<vmem>>, %arg12: memref<16x64xf32, #tpu.memory_space<vmem>>) attributes {dimension_semantics = [#tpu.dimension_semantics<arbitrary>], iteration_bounds = array<i64: 1>, scalar_prefetch = 0 : i64, scratch_operands = 0 : i64, tpu.core_type = #tpu.core_type<tc>, window_params = [{pipeline_mode = #tpu.pipeline_mode<synchronous>, transform_indices = @transform_0, window_bounds = array<i64: 16, 64>}, {pipeline_mode = #tpu.pipeline_mode<synchronous>, transform_indices = @transform_1, window_bounds = array<i64: 16, 2>}, {pipeline_mode = #tpu.pipeline_mode<synchronous>, transform_indices = @transform_2, window_bounds = array<i64: 64, 64>}, {pipeline_mode = #tpu.pipeline_mode<synchronous>, transform_indices = @transform_3, window_bounds = array<i64: 1, 64>}, {pipeline_mode = #tpu.pipeline_mode<synchronous>, transform_indices = @transform_4, window_bounds = array<i64: 64, 64>}, {pipeline_mode = #tpu.pipeline_mode<synchronous>, transform_indices = @transform_5, window_bounds = array<i64: 1, 64>}, {pipeline_mode = #tpu.pipeline_mode<synchronous>, transform_indices = @transform_6, window_bounds = array<i64: 115, 64>}, {pipeline_mode = #tpu.pipeline_mode<synchronous>, transform_indices = @transform_7, window_bounds = array<i64: 1, 64>}, {pipeline_mode = #tpu.pipeline_mode<synchronous>, transform_indices = @transform_8, window_bounds = array<i64: 64, 64>}, {pipeline_mode = #tpu.pipeline_mode<synchronous>, transform_indices = @transform_9, window_bounds = array<i64: 1, 64>}, {pipeline_mode = #tpu.pipeline_mode<synchronous>, transform_indices = @transform_10, window_bounds = array<i64: 16, 64>}, {pipeline_mode = #tpu.pipeline_mode<synchronous>, transform_indices = @transform_11, window_bounds = array<i64: 16, 64>}]} {
    %c0 = arith.constant 0 : index
    %c0_0 = arith.constant 0 : index
    %0 = vector.load %arg1[%c0, %c0_0] : memref<16x64xf32, #tpu.memory_space<vmem>>, vector<16x64xf32>
    %c0_1 = arith.constant 0 : index
    %c0_2 = arith.constant 0 : index
    %1 = vector.load %arg3[%c0_1, %c0_2] : memref<64x64xf32, #tpu.memory_space<vmem>>, vector<64x64xf32>
    %cst = arith.constant dense<0.000000e+00> : vector<16x64xf32>
    %2 = tpu.matmul %0, %1, %cst {dimension_numbers = #tpu.dot_dimension_numbers<[1], [0], [0], [1], [0, 0, 1, 1], [], []>} : vector<16x64xf32>, vector<64x64xf32>, vector<16x64xf32> -> vector<16x64xf32>
    %c0_3 = arith.constant 0 : index
    %c0_4 = arith.constant 0 : index
    %3 = vector.load %arg4[%c0_3, %c0_4] : memref<1x64xf32, #tpu.memory_space<vmem>>, vector<1x64xf32>
    %4 = vector.broadcast %3 : vector<1x64xf32> to vector<16x64xf32>
    %5 = arith.addf %2, %4 : vector<16x64xf32>
    %cst_5 = arith.constant dense<0.000000e+00> : vector<64xf32>
    %6 = vector.multi_reduction <add>, %5, %cst_5 [0] : vector<16x64xf32> to vector<64xf32>
    %7 = vector.shape_cast %6 : vector<64xf32> to vector<1x64xf32>
    %cst_6 = arith.constant 1.600000e+01 : f32
    %8 = vector.broadcast %cst_6 : f32 to vector<1x64xf32>
    %9 = arith.divf %7, %8 : vector<1x64xf32>
    %10 = vector.broadcast %9 : vector<1x64xf32> to vector<16x64xf32>
    %11 = arith.subf %5, %10 : vector<16x64xf32>
    %12 = arith.mulf %11, %11 : vector<16x64xf32>
    %cst_7 = arith.constant dense<0.000000e+00> : vector<64xf32>
    %13 = vector.multi_reduction <add>, %12, %cst_7 [0] : vector<16x64xf32> to vector<64xf32>
    %14 = vector.shape_cast %13 : vector<64xf32> to vector<1x64xf32>
    %cst_8 = arith.constant 1.600000e+01 : f32
    %15 = vector.broadcast %cst_8 : f32 to vector<1x64xf32>
    %16 = arith.divf %14, %15 : vector<1x64xf32>
    %17 = vector.broadcast %9 : vector<1x64xf32> to vector<16x64xf32>
    %18 = arith.subf %5, %17 : vector<16x64xf32>
    %cst_9 = arith.constant 9.99999974E-6 : f32
    %19 = vector.broadcast %cst_9 : f32 to vector<1x64xf32>
    %20 = arith.addf %16, %19 : vector<1x64xf32>
    %21 = math.rsqrt %20 : vector<1x64xf32>
    %22 = vector.broadcast %21 : vector<1x64xf32> to vector<16x64xf32>
    %23 = arith.mulf %18, %22 : vector<16x64xf32>
    %cst_10 = arith.constant 0.000000e+00 : f32
    %24 = vector.broadcast %cst_10 : f32 to vector<16x64xf32>
    %25 = arith.maximumf %23, %24 : vector<16x64xf32>
    %c0_11 = arith.constant 0 : index
    %c0_12 = arith.constant 0 : index
    %26 = vector.load %arg5[%c0_11, %c0_12] : memref<64x64xf32, #tpu.memory_space<vmem>>, vector<64x64xf32>
    %cst_13 = arith.constant dense<0.000000e+00> : vector<16x64xf32>
    %27 = tpu.matmul %25, %26, %cst_13 {dimension_numbers = #tpu.dot_dimension_numbers<[1], [0], [0], [1], [0, 0, 1, 1], [], []>} : vector<16x64xf32>, vector<64x64xf32>, vector<16x64xf32> -> vector<16x64xf32>
    %c0_14 = arith.constant 0 : index
    %c0_15 = arith.constant 0 : index
    %28 = vector.load %arg6[%c0_14, %c0_15] : memref<1x64xf32, #tpu.memory_space<vmem>>, vector<1x64xf32>
    %29 = vector.broadcast %28 : vector<1x64xf32> to vector<16x64xf32>
    %30 = arith.addf %27, %29 : vector<16x64xf32>
    %cst_16 = arith.constant dense<0.000000e+00> : vector<64xf32>
    %31 = vector.multi_reduction <add>, %30, %cst_16 [0] : vector<16x64xf32> to vector<64xf32>
    %32 = vector.shape_cast %31 : vector<64xf32> to vector<1x64xf32>
    %cst_17 = arith.constant 1.600000e+01 : f32
    %33 = vector.broadcast %cst_17 : f32 to vector<1x64xf32>
    %34 = arith.divf %32, %33 : vector<1x64xf32>
    %35 = vector.broadcast %34 : vector<1x64xf32> to vector<16x64xf32>
    %36 = arith.subf %30, %35 : vector<16x64xf32>
    %37 = arith.mulf %36, %36 : vector<16x64xf32>
    %cst_18 = arith.constant dense<0.000000e+00> : vector<64xf32>
    %38 = vector.multi_reduction <add>, %37, %cst_18 [0] : vector<16x64xf32> to vector<64xf32>
    %39 = vector.shape_cast %38 : vector<64xf32> to vector<1x64xf32>
    %cst_19 = arith.constant 1.600000e+01 : f32
    %40 = vector.broadcast %cst_19 : f32 to vector<1x64xf32>
    %41 = arith.divf %39, %40 : vector<1x64xf32>
    %42 = vector.broadcast %34 : vector<1x64xf32> to vector<16x64xf32>
    %43 = arith.subf %30, %42 : vector<16x64xf32>
    %cst_20 = arith.constant 9.99999974E-6 : f32
    %44 = vector.broadcast %cst_20 : f32 to vector<1x64xf32>
    %45 = arith.addf %41, %44 : vector<1x64xf32>
    %46 = math.rsqrt %45 : vector<1x64xf32>
    %47 = vector.broadcast %46 : vector<1x64xf32> to vector<16x64xf32>
    %48 = arith.mulf %43, %47 : vector<16x64xf32>
    %c0_21 = arith.constant 0 : index
    %c0_22 = arith.constant 0 : index
    %49 = vector.load %arg11[%c0_21, %c0_22] : memref<16x64xf32, #tpu.memory_space<vmem>>, vector<16x64xf32>
    tpu.vector_store %arg11[%c0_21, %c0_22], %48 {strides = array<i32>} : memref<16x64xf32, #tpu.memory_space<vmem>>, vector<16x64xf32>,
    %c0_23 = arith.constant 0 : index
    %c0_24 = arith.constant 0 : index
    %50 = vector.load %arg2[%c0_23, %c0_24] : memref<16x2xi32, #tpu.memory_space<vmem>>, vector<16x2xi32>
    %51 = tpu.iota {dimensions = array<i32: 1>} : vector<16x115xi32>
    %52 = vector.extract_strided_slice %50 {offsets = [0, 0], sizes = [16, 1], strides = [1, 1]} : vector<16x2xi32> to vector<16x1xi32>
    %53 = vector.broadcast %52 : vector<16x1xi32> to vector<16x115xi32>
    %54 = arith.cmpi eq, %51, %53 : vector<16x115xi32>
    %cst_25 = arith.constant 1.000000e+00 : f32
    %cst_26 = arith.constant 0.000000e+00 : f32
    %55 = vector.broadcast %cst_25 : f32 to vector<16x115xf32>
    %56 = vector.broadcast %cst_26 : f32 to vector<16x115xf32>
    %57 = arith.select %54, %55, %56 : vector<16x115xi1>, vector<16x115xf32>
    %58 = vector.extract_strided_slice %50 {offsets = [0, 1], sizes = [16, 1], strides = [1, 1]} : vector<16x2xi32> to vector<16x1xi32>
    %c7_i32 = arith.constant 7 : i32
    %59 = vector.broadcast %c7_i32 : i32 to vector<16x1xi32>
    %60 = arith.addi %59, %58 : vector<16x1xi32>
    %61 = vector.broadcast %60 : vector<16x1xi32> to vector<16x115xi32>
    %62 = arith.cmpi eq, %51, %61 : vector<16x115xi32>
    %cst_27 = arith.constant 1.000000e+00 : f32
    %cst_28 = arith.constant 0.000000e+00 : f32
    %63 = vector.broadcast %cst_27 : f32 to vector<16x115xf32>
    %64 = vector.broadcast %cst_28 : f32 to vector<16x115xf32>
    %65 = arith.select %62, %63, %64 : vector<16x115xi1>, vector<16x115xf32>
    %66 = arith.addf %57, %65 : vector<16x115xf32>
    %c0_29 = arith.constant 0 : index
    %c0_30 = arith.constant 0 : index
    %67 = vector.load %arg7[%c0_29, %c0_30] : memref<115x64xf32, #tpu.memory_space<vmem>>, vector<115x64xf32>
    %cst_31 = arith.constant dense<0.000000e+00> : vector<16x64xf32>
    %68 = tpu.matmul %66, %67, %cst_31 {dimension_numbers = #tpu.dot_dimension_numbers<[1], [0], [0], [1], [0, 0, 1, 1], [], []>} : vector<16x115xf32>, vector<115x64xf32>, vector<16x64xf32> -> vector<16x64xf32>
    %c0_32 = arith.constant 0 : index
    %c0_33 = arith.constant 0 : index
    %69 = vector.load %arg8[%c0_32, %c0_33] : memref<1x64xf32, #tpu.memory_space<vmem>>, vector<1x64xf32>
    %70 = vector.broadcast %69 : vector<1x64xf32> to vector<16x64xf32>
    %71 = arith.addf %68, %70 : vector<16x64xf32>
    %cst_34 = arith.constant dense<0.000000e+00> : vector<64xf32>
    %72 = vector.multi_reduction <add>, %71, %cst_34 [0] : vector<16x64xf32> to vector<64xf32>
    %73 = vector.shape_cast %72 : vector<64xf32> to vector<1x64xf32>
    %cst_35 = arith.constant 1.600000e+01 : f32
    %74 = vector.broadcast %cst_35 : f32 to vector<1x64xf32>
    %75 = arith.divf %73, %74 : vector<1x64xf32>
    %76 = vector.broadcast %75 : vector<1x64xf32> to vector<16x64xf32>
    %77 = arith.subf %71, %76 : vector<16x64xf32>
    %78 = arith.mulf %77, %77 : vector<16x64xf32>
    %cst_36 = arith.constant dense<0.000000e+00> : vector<64xf32>
    %79 = vector.multi_reduction <add>, %78, %cst_36 [0] : vector<16x64xf32> to vector<64xf32>
    %80 = vector.shape_cast %79 : vector<64xf32> to vector<1x64xf32>
    %cst_37 = arith.constant 1.600000e+01 : f32
    %81 = vector.broadcast %cst_37 : f32 to vector<1x64xf32>
    %82 = arith.divf %80, %81 : vector<1x64xf32>
    %83 = vector.broadcast %75 : vector<1x64xf32> to vector<16x64xf32>
    %84 = arith.subf %71, %83 : vector<16x64xf32>
    %cst_38 = arith.constant 9.99999974E-6 : f32
    %85 = vector.broadcast %cst_38 : f32 to vector<1x64xf32>
    %86 = arith.addf %82, %85 : vector<1x64xf32>
    %87 = math.rsqrt %86 : vector<1x64xf32>
    %88 = vector.broadcast %87 : vector<1x64xf32> to vector<16x64xf32>
    %89 = arith.mulf %84, %88 : vector<16x64xf32>
    %cst_39 = arith.constant 0.000000e+00 : f32
    %90 = vector.broadcast %cst_39 : f32 to vector<16x64xf32>
    %91 = arith.maximumf %89, %90 : vector<16x64xf32>
    %c0_40 = arith.constant 0 : index
    %c0_41 = arith.constant 0 : index
    %92 = vector.load %arg9[%c0_40, %c0_41] : memref<64x64xf32, #tpu.memory_space<vmem>>, vector<64x64xf32>
    %cst_42 = arith.constant dense<0.000000e+00> : vector<16x64xf32>
    %93 = tpu.matmul %91, %92, %cst_42 {dimension_numbers = #tpu.dot_dimension_numbers<[1], [0], [0], [1], [0, 0, 1, 1], [], []>} : vector<16x64xf32>, vector<64x64xf32>, vector<16x64xf32> -> vector<16x64xf32>
    %c0_43 = arith.constant 0 : index
    %c0_44 = arith.constant 0 : index
    %94 = vector.load %arg10[%c0_43, %c0_44] : memref<1x64xf32, #tpu.memory_space<vmem>>, vector<1x64xf32>
    %95 = vector.broadcast %94 : vector<1x64xf32> to vector<16x64xf32>
    %96 = arith.addf %93, %95 : vector<16x64xf32>
    %cst_45 = arith.constant dense<0.000000e+00> : vector<64xf32>
    %97 = vector.multi_reduction <add>, %96, %cst_45 [0] : vector<16x64xf32> to vector<64xf32>
    %98 = vector.shape_cast %97 : vector<64xf32> to vector<1x64xf32>
    %cst_46 = arith.constant 1.600000e+01 : f32
    %99 = vector.broadcast %cst_46 : f32 to vector<1x64xf32>
    %100 = arith.divf %98, %99 : vector<1x64xf32>
    %101 = vector.broadcast %100 : vector<1x64xf32> to vector<16x64xf32>
    %102 = arith.subf %96, %101 : vector<16x64xf32>
    %103 = arith.mulf %102, %102 : vector<16x64xf32>
    %cst_47 = arith.constant dense<0.000000e+00> : vector<64xf32>
    %104 = vector.multi_reduction <add>, %103, %cst_47 [0] : vector<16x64xf32> to vector<64xf32>
    %105 = vector.shape_cast %104 : vector<64xf32> to vector<1x64xf32>
    %cst_48 = arith.constant 1.600000e+01 : f32
    %106 = vector.broadcast %cst_48 : f32 to vector<1x64xf32>
    %107 = arith.divf %105, %106 : vector<1x64xf32>
    %108 = vector.broadcast %100 : vector<1x64xf32> to vector<16x64xf32>
    %109 = arith.subf %96, %108 : vector<16x64xf32>
    %cst_49 = arith.constant 9.99999974E-6 : f32
    %110 = vector.broadcast %cst_49 : f32 to vector<1x64xf32>
    %111 = arith.addf %107, %110 : vector<1x64xf32>
    %112 = math.rsqrt %111 : vector<1x64xf32>
    %113 = vector.broadcast %112 : vector<1x64xf32> to vector<16x64xf32>
    %114 = arith.mulf %109, %113 : vector<16x64xf32>
    %c0_50 = arith.constant 0 : index
    %c0_51 = arith.constant 0 : index
    %115 = vector.load %arg12[%c0_50, %c0_51] : memref<16x64xf32, #tpu.memory_space<vmem>>, vector<16x64xf32>
    tpu.vector_store %arg12[%c0_50, %c0_51], %114 {strides = array<i32>} : memref<16x64xf32, #tpu.memory_space<vmem>>, vector<16x64xf32>,
    return
  }
  func.func @transform_0(%arg0: i32) -> (i32, i32) {
    %c0_i32 = arith.constant 0 : i32
    %c0_i32_0 = arith.constant 0 : i32
    %c0_i32_1 = arith.constant 0 : i32
    return %c0_i32, %c0_i32_0 : i32, i32
  }
  func.func @transform_1(%arg0: i32) -> (i32, i32) {
    %c0_i32 = arith.constant 0 : i32
    %c0_i32_0 = arith.constant 0 : i32
    %c0_i32_1 = arith.constant 0 : i32
    return %c0_i32, %c0_i32_0 : i32, i32
  }
  func.func @transform_2(%arg0: i32) -> (i32, i32) {
    %c0_i32 = arith.constant 0 : i32
    %c0_i32_0 = arith.constant 0 : i32
    %c0_i32_1 = arith.constant 0 : i32
    return %c0_i32, %c0_i32_0 : i32, i32
  }
  func.func @transform_3(%arg0: i32) -> (i32, i32) {
    %c0_i32 = arith.constant 0 : i32
    %c0_i32_0 = arith.constant 0 : i32
    %c0_i32_1 = arith.constant 0 : i32
    return %c0_i32, %c0_i32_0 : i32, i32
  }
  func.func @transform_4(%arg0: i32) -> (i32, i32) {
    %c0_i32 = arith.constant 0 : i32
    %c0_i32_0 = arith.constant 0 : i32
    %c0_i32_1 = arith.constant 0 : i32
    return %c0_i32, %c0_i32_0 : i32, i32
  }
  func.func @transform_5(%arg0: i32) -> (i32, i32) {
    %c0_i32 = arith.constant 0 : i32
    %c0_i32_0 = arith.constant 0 : i32
    %c0_i32_1 = arith.constant 0 : i32
    return %c0_i32, %c0_i32_0 : i32, i32
  }
  func.func @transform_6(%arg0: i32) -> (i32, i32) {
    %c0_i32 = arith.constant 0 : i32
    %c0_i32_0 = arith.constant 0 : i32
    %c0_i32_1 = arith.constant 0 : i32
    return %c0_i32, %c0_i32_0 : i32, i32
  }
  func.func @transform_7(%arg0: i32) -> (i32, i32) {
    %c0_i32 = arith.constant 0 : i32
    %c0_i32_0 = arith.constant 0 : i32
    %c0_i32_1 = arith.constant 0 : i32
    return %c0_i32, %c0_i32_0 : i32, i32
  }
  func.func @transform_8(%arg0: i32) -> (i32, i32) {
    %c0_i32 = arith.constant 0 : i32
    %c0_i32_0 = arith.constant 0 : i32
    %c0_i32_1 = arith.constant 0 : i32
    return %c0_i32, %c0_i32_0 : i32, i32
  }
  func.func @transform_9(%arg0: i32) -> (i32, i32) {
    %c0_i32 = arith.constant 0 : i32
    %c0_i32_0 = arith.constant 0 : i32
    %c0_i32_1 = arith.constant 0 : i32
    return %c0_i32, %c0_i32_0 : i32, i32
  }
  func.func @transform_10(%arg0: i32) -> (i32, i32) {
    %c0_i32 = arith.constant 0 : i32
    %c0_i32_0 = arith.constant 0 : i32
    %c0_i32_1 = arith.constant 0 : i32
    return %c0_i32, %c0_i32_0 : i32, i32
  }
  func.func @transform_11(%arg0: i32) -> (i32, i32) {
    %c0_i32 = arith.constant 0 : i32
    %c0_i32_0 = arith.constant 0 : i32
    %c0_i32_1 = arith.constant 0 : i32
    return %c0_i32, %c0_i32_0 : i32, i32
  }
}

</mosaic_0001>

<bundles_post_ra>
// kernel: tpu_custom_call.1
= control target key start
LH: loop header
LB: loop body
LE: loop exit
PB: predicated region body
PF: predicated region fallthrough
CT: control target
= control target key end

     0   :  { %17 = vsyncpa [#allocation3], 0  ;;  %s1226_s0 = inlined_call_operand.hbm [shape: f32[16,64], index: 0, kind: input, shape index: {}]   ;;  %s1227_s1 = inlined_call_operand.vmem [shape: s32[16,2], index: 1, kind: input, shape index: {}]   ;;  %s1228_s2 = inlined_call_operand.vmem [shape: f32[64,64], index: 2, kind: input, shape index: {}]   ;;  %s1229_s3 = inlined_call_operand.vmem [shape: f32[1,64], index: 3, kind: input, shape index: {}]   ;;  %s1230_s4 = inlined_call_operand.vmem [shape: f32[64,64], index: 4, kind: input, shape index: {}]   ;;  %s1231_s5 = inlined_call_operand.vmem [shape: f32[1,64], index: 5, kind: input, shape index: {}]   ;;  %s1232_s6 = inlined_call_operand.vmem [shape: f32[115,64], index: 6, kind: input, shape index: {}]   ;;  %s1233_s7 = inlined_call_operand.vmem [shape: f32[1,64], index: 7, kind: input, shape index: {}]   ;;  %s1234_s8 = inlined_call_operand.vmem [shape: f32[64,64], index: 8, kind: input, shape index: {}]   ;;  %s1235_s9 = inlined_call_operand.vmem [shape: f32[1,64], index: 9, kind: input, shape index: {}]   ;;  %s1236_s10 = inlined_call_operand.hbm [shape: f32[16,64], index: 10, kind: output, shape index: {0}]   ;;  %s1237_s11 = inlined_call_operand.hbm [shape: f32[16,64], index: 11, kind: output, shape index: {1}]  }
   0x1   :  { %18 = vsyncpa [#allocation4], 0 }
   0x2   :  { %19 = vsyncpa [#allocation7], 0  ;;  %s952_s17 = smov [#allocation2]   ;;  %s880_s21 = scalar_lea.hbm %s1226_s0, 256 }
   0x3   :  { %s25_s18 = sshll.u32 %s952_s17, 4  ;;  %p881_p0 = scmp.ne.s32.totalorder %s1226_s0, %s880_s21  ;;  %s26_s18 = int_to_ptr.vmem [resolvable:$true] %s25_s18 }
   0x4   :  { %p884_p1 = scmp.lt.u32.totalorder %s880_s21, %s1226_s0 }
   0x6   :  { %p886_p2 = pnand %p884_p1, %p881_p0 }
   0x8   :  { %889 = shalt.err (!%p886_p2)
}
   0x9   :  { %s890_s26 = scalar_lea.vmem %s26_s18, 256  ;;  %p895_p4 = scmp.lt.s32.totalorder %s26_s18, %s26_s18 }
   0xa   :  { %p891_p3 = scmp.ne.s32.totalorder %s26_s18, %s890_s26  ;;  %p896_p5 = scmp.lt.s32.totalorder %s890_s26, %s890_s26 }
   0xc   :  { %p897_p6 = por %p896_p5, %p895_p4 }
   0xe   :  { %p898_p7 = pnand %p897_p6, %p891_p3 }
  0x10   :  { %901 = shalt.err (!%p898_p7)
}
  0x11   :  { %s953_s27 = smov 128   ;;  %s954_s28 = smov 8  }
  0x12   :  { %31 = dma.hbm_to_vmem [thread:$0]  %s1226_s0, 256, %s26_s18, [#allocation3], %s953_s27, %s953_s27, %s954_s28  }
  0x13   :  { %946 = dma.done.wait [#allocation3], 256  }
  0x14   :  { %947 = vsyncadd [#allocation3], 4294967040  ;;  %v955_v0 = vmov 0   ;;  %v310_v1 = vld [vmem:[%s1227_s1 + $0x8] sm:$0xff]  ;;  %v309_v2 = vld [vmem:[%s1227_s1] sm:$0xff]  ;;  %vm70_vm0 = vcmask 523264   ;;  %v311_v42 = vlaneseq }
  0x15   :  { %870 = vset.pattern.permute.xlu1 %v955_v0  ;;  %868 = vset.pattern.permute.xlu0 %v955_v0  ;;  %v55_v3 = vld [vmem:[%s1228_s2] sm:$0xff]  ;;  %v56_v4 = vld [vmem:[%s1228_s2 + $0x8] sm:$0xff]  ;;  %v57_v5 = vld [vmem:[%s1228_s2 + $0x10] sm:$0xff]  ;;  %v324_v7 = vadd.s32 7, %v310_v1  ;;  %v323_v9 = vadd.s32 7, %v309_v2  ;;  %v956_v14 = vmov 1  }
  0x16   :  { %317 = vperm.xlu1 %870, %v310_v1   ;;  %314 = vperm.xlu0 %868, %v309_v2   ;;  %v58_v6 = vld [vmem:[%s1228_s2 + $0x18] sm:$0xff]  ;;  %v784_v8 = vpack.c.bf16 %v56_v4, %v55_v3  ;;  %v59_v11 = vld [vmem:[%s1228_s2 + $0x20] sm:$0xff]  ;;  %v60_v12 = vld [vmem:[%s1228_s2 + $0x28] sm:$0xff]  ;;  %vm366_vm1 = vcmask 1042432   ;;  %v312_v43 = vand.u32 127, %v311_v42  ;;  %v957_v48 = vmov 0.0  }
  0x17   :  { %v788_v10 = vpack.c.bf16 %v58_v6, %v57_v5  ;;  %v53_v13 = vld [vmem:[#allocation2] sm:$0xff]  ;;  %v792_v15 = vpack.c.bf16 %v60_v12, %v59_v11  ;;  %v61_v16 = vld [vmem:[%s1228_s2 + $0x30] sm:$0xff]  ;;  %v62_v17 = vld [vmem:[%s1228_s2 + $0x38] sm:$0xff]  ;;  %vm359_vm6 = vcmask 941056  }
  0x18   :  { %785 = vmatprep.subr.bf16.mxu0 %v784_v8  ;;  %710 = vmatprep.mubr.msk.f32.mxu0 %vm70_vm0, %v53_v13  ;;  %v796_v18 = vpack.c.bf16 %v62_v17, %v61_v16  ;;  %v337_v19 = vld [vmem:[%s1232_s6] sm:$0xff]  ;;  %v338_v20 = vld [vmem:[%s1232_s6 + $0x8] sm:$0xff]  ;;  %v339_v22 = vld [vmem:[%s1232_s6 + $0x10] sm:$0xff] }
  0x19   :  { %787 = vmatpush3.bf16.msra.mxu0 %v784_v8  ;;  %v816_v21 = vpack.c.bf16 %v338_v20, %v337_v19  ;;  %v340_v23 = vld [vmem:[%s1232_s6 + $0x18] sm:$0xff]  ;;  %v54_v24 = vld [vmem:[#allocation2 + $0x8] sm:$0xff]  ;;  %v341_v26 = vld [vmem:[%s1232_s6 + $0x20] sm:$0xff] }
  0x1a   :  { %871 = vset.pattern.permute.xlu1 %v956_v14  ;;  %869 = vset.pattern.permute.xlu0 %v956_v14  ;;  %v820_v25 = vpack.c.bf16 %v340_v23, %v339_v22  ;;  %v342_v27 = vld [vmem:[%s1232_s6 + $0x28] sm:$0xff]  ;;  %v343_v29 = vld [vmem:[%s1232_s6 + $0x30] sm:$0xff]  ;;  %v344_v30 = vld [vmem:[%s1232_s6 + $0x38] sm:$0xff] }
  0x1b   :  { %329 = vperm.xlu1 %871, %v324_v7   ;;  %326 = vperm.xlu0 %869, %v323_v9   ;;  %v824_v28 = vpack.c.bf16 %v342_v27, %v341_v26  ;;  %v828_v31 = vpack.c.bf16 %v344_v30, %v343_v29  ;;  %v345_v32 = vld [vmem:[%s1232_s6 + $0x40] sm:$0xff]  ;;  %v346_v33 = vld [vmem:[%s1232_s6 + $0x48] sm:$0xff]  ;;  %v347_v35 = vld [vmem:[%s1232_s6 + $0x50] sm:$0xff] }
  0x1c   :  { %789 = vmatprep.subr.bf16.mxu0 %v788_v10  ;;  %v832_v34 = vpack.c.bf16 %v346_v33, %v345_v32  ;;  %v348_v36 = vld [vmem:[%s1232_s6 + $0x58] sm:$0xff]  ;;  %v349_v38 = vld [vmem:[%s1232_s6 + $0x60] sm:$0xff]  ;;  %v350_v39 = vld [vmem:[%s1232_s6 + $0x68] sm:$0xff] }
  0x1d   :  { %791 = vmatpush3.bf16.msra.mxu0 %v788_v10  ;;  %v836_v37 = vpack.c.bf16 %v348_v36, %v347_v35  ;;  %v840_v40 = vpack.c.bf16 %v350_v39, %v349_v38  ;;  %v351_v41 = vld [vmem:[%s1232_s6 + $0x70] sm:$0x7]  ;;  %v183_v55 = vld [vmem:[%s1230_s4] sm:$0xff]  ;;  %v184_v56 = vld [vmem:[%s1230_s4 + $0x8] sm:$0xff] }
  0x1e   :  { %793 = vmatprep.subr.bf16.mxu0 %v792_v15  ;;  %v185_v57 = vld [vmem:[%s1230_s4 + $0x10] sm:$0xff]  ;;  %v800_v58 = vpack.c.bf16 %v184_v56, %v183_v55  ;;  %v186_v59 = vld [vmem:[%s1230_s4 + $0x18] sm:$0xff]  ;;  %v187_v61 = vld [vmem:[%s1230_s4 + $0x20] sm:$0xff] }
  0x1f   :  { %v804_v60 = vpack.c.bf16 %v186_v59, %v185_v57  ;;  %v188_v62 = vld [vmem:[%s1230_s4 + $0x28] sm:$0xff]  ;;  %v189_v0 = vld [vmem:[%s1230_s4 + $0x30] sm:$0xff]  ;;  %v190_v1 = vld [vmem:[%s1230_s4 + $0x38] sm:$0xff] }
  0x20   :  { %801 = vmatprep.subr.bf16.mxu1 %v800_v58  ;;  %v808_v63 = vpack.c.bf16 %v188_v62, %v187_v61  ;;  %v812_v2 = vpack.c.bf16 %v190_v1, %v189_v0  ;;  %v634_v3 = vld [vmem:[%s1229_s3] ss:$0 sm:$0xff]  ;;  %v476_v29 = vld [vmem:[%s1234_s8 + $0x8] sm:$0xff]  ;;  %v477_v39 = vld [vmem:[%s1234_s8 + $0x10] sm:$0xff] }
  0x21   :  { %795 = vmatpush3.bf16.msra.mxu0 %v792_v15  ;;  %803 = vmatpush3.bf16.msra.mxu1 %v800_v58 }
  0x22   :  { %797 = vmatprep.subr.bf16.mxu0 %v796_v18  ;;  %805 = vmatprep.subr.bf16.mxu1 %v804_v60 }
  0x25   :  { %799 = vmatpush3.bf16.msra.mxu0 %v796_v18  ;;  %807 = vmatpush3.bf16.msra.mxu1 %v804_v60 }
  0x26   :  { %817 = vmatprep.subr.bf16.mxu0 %v816_v21  ;;  %809 = vmatprep.subr.bf16.mxu1 %v808_v63 }
  0x28   :  { %711 = vmatmul.mubr.msk.f32.vlgmr.msra.gmra.mrb[0].mxu0 %vm70_vm0, %v54_v24 }
  0x29   :  { %819 = vmatpush3.bf16.msra.mxu0 %v816_v21  ;;  %811 = vmatpush3.bf16.msra.mxu1 %v808_v63 }
  0x2a   :  { %821 = vmatprep.subr.bf16.mxu0 %v820_v25  ;;  %813 = vmatprep.subr.bf16.mxu1 %v812_v2 }
  0x2d   :  { %823 = vmatpush3.bf16.msra.mxu0 %v820_v25  ;;  %815 = vmatpush3.bf16.msra.mxu1 %v812_v2 }
  0x2e   :  { %825 = vmatprep.subr.bf16.mxu0 %v824_v28 }
  0x31   :  { %827 = vmatpush3.bf16.msra.mxu0 %v824_v28  ;;  %v475_v28 = vld [vmem:[%s1234_s8] sm:$0xff] }
  0x32   :  { %829 = vmatprep.subr.bf16.mxu0 %v828_v31 }
  0x35   :  { %831 = vmatpush3.bf16.msra.mxu0 %v828_v31  ;;  %v844_v31 = vpack.c.bf16 %v476_v29, %v475_v28 }
  0x36   :  { %833 = vmatprep.subr.bf16.mxu0 %v832_v34 }
  0x37   :  { %845 = vmatprep.subr.bf16.mxu1 %v844_v31 }
  0x39   :  { %835 = vmatpush3.bf16.msra.mxu0 %v832_v34 }
  0x3a   :  { %837 = vmatprep.subr.bf16.mxu0 %v836_v37 }
  0x3d   :  { %839 = vmatpush3.bf16.msra.mxu0 %v836_v37 }
  0x3e   :  { %841 = vmatprep.subr.bf16.mxu0 %v840_v40 }
  0x41   :  { %843 = vmatpush3.bf16.msra.mxu0 %v840_v40  ;;  %v478_v40 = vld [vmem:[%s1234_s8 + $0x18] sm:$0xff] }
  0x42   :  { %760 = vmatprep.subr.msk.mxu0 %vm366_vm1, %v351_v41 }
  0x45   :  { %761 = vmatpush3.msk.msra.mxu0 %vm366_vm1, %v351_v41 }
  0x95   :  { %v315_v44 = vpop.permute.xlu0 %314  ;;  %v318_v45 = vpop.permute.xlu1 %317 }
  0x96   :  { %vm320_vm2 = vcmp.eq.s32.totalorder %v312_v43, %v318_v45  ;;  %vm319_vm3 = vcmp.eq.s32.totalorder %v312_v43, %v315_v44  ;;  %v479_v44 = vld [vmem:[%s1234_s8 + $0x20] sm:$0xff]  ;;  %v480_v45 = vld [vmem:[%s1234_s8 + $0x28] sm:$0xff] }
  0x97   :  { %v322_v49 = vsel %vm320_vm2, 1.0, %v957_v48  ;;  %v321_v51 = vsel %vm319_vm3, 1.0, %v957_v48 }
  0x9a   :  { %v330_v46 = vpop.permute.xlu1 %329  ;;  %v327_v47 = vpop.permute.xlu0 %326 }
  0x9b   :  { %vm332_vm4 = vcmp.eq.s32.totalorder %v312_v43, %v330_v46  ;;  %vm331_vm5 = vcmp.eq.s32.totalorder %v312_v43, %v327_v47  ;;  %v848_v43 = vpack.c.bf16 %v478_v40, %v477_v39  ;;  %v852_v46 = vpack.c.bf16 %v480_v45, %v479_v44  ;;  %v481_v47 = vld [vmem:[%s1234_s8 + $0x30] sm:$0xff] }
  0x9c   :  { %v334_v50 = vsel %vm332_vm4, 1.0, %v957_v48  ;;  %v333_v53 = vsel %vm331_vm5, 1.0, %v957_v48  ;;  %v482_v48 = vld [vmem:[%s1234_s8 + $0x38] sm:$0xff] }
  0x9d   :  { %v336_v52 = vadd.f32 %v334_v50, %v322_v49  ;;  %v335_v54 = vadd.f32 %v333_v53, %v321_v51  ;;  %v856_v49 = vpack.c.bf16 %v482_v48, %v481_v47  ;;  %v640_v50 = vld [vmem:[%s1233_s7] ss:$0 sm:$0xff] }
  0x9f   :  { %762 = vmatprep.mubr.msk.f32.mxu0 %vm359_vm6, %v335_v54 }
  0xa0   :  { %763 = vmatmul.mubr.msk.f32.vlgmr.msra.gmra.mrb[2].mxu0 %vm359_vm6, %v336_v52 }
  0xfb   :  { %v712_v4 = vpop.f32.mrb[0].mxu0 }
  0xfc   :  { %v149_v5 = vadd.f32 %v712_v4, %v634_v3  ;;  %v143_v6 = vpop.f32.mrb[1].mxu0 }
  0xfd   :  { %v144_v7 = vadd.f32 %v634_v3, %v143_v6 }
  0xfe   :  { %v153_v8 = vsel %vm70_vm0, %v149_v5, 0.0 }
  0xff   :  { %v152_v9 = vsel %vm70_vm0, %v144_v7, 0.0 }
 0x100   :  { %v154_v10 = vadd.f32 %v153_v8, %v152_v9 }
 0x102   :  { %v155_v11 = vrot.slane %v154_v10, 4 }
 0x104   :  { %v156_v12 = vadd.f32 %v155_v11, %v154_v10 }
 0x106   :  { %v157_v13 = vrot.slane %v156_v12, 2 }
 0x108   :  { %v158_v14 = vadd.f32 %v157_v13, %v156_v12 }
 0x10a   :  { %v159_v15 = vrot.slane %v158_v14, 1 }
 0x10c   :  { %v160_v16 = vadd.f32 %v159_v15, %v158_v14 }
 0x10e   :  { %v162_v17 = vmul.f32 0.0625, %v160_v16 }
 0x110   :  { %v163_v18 = vsub.f32 %v144_v7, %v162_v17  ;;  %v164_v19 = vsub.f32 %v149_v5, %v162_v17 }
 0x112   :  { %v165_v20 = vmul.f32 %v163_v18, %v163_v18  ;;  %v166_v21 = vmul.f32 %v164_v19, %v164_v19 }
 0x114   :  { %v167_v22 = vsel %vm70_vm0, %v165_v20, 0.0  ;;  %v168_v23 = vsel %vm70_vm0, %v166_v21, 0.0  ;;  %v637_v21 = vld [vmem:[%s1231_s5] ss:$0 sm:$0xff]  ;;  %s958_s5 = smov [#allocation5]  }
 0x115   :  { %v169_v24 = vadd.f32 %v168_v23, %v167_v22  ;;  %s606_s15 = sshll.u32 %s958_s5, 4  ;;  %s607_s15 = int_to_ptr.vmem [resolvable:$true] %s606_s15 }
 0x116   :  { %s902_s16 = scalar_lea.vmem %s607_s15, 256  ;;  %p907_p9 = scmp.lt.s32.totalorder %s607_s15, %s607_s15 }
 0x117   :  { %v170_v25 = vrot.slane %v169_v24, 4  ;;  %p903_p8 = scmp.ne.s32.totalorder %s607_s15, %s902_s16  ;;  %p908_p10 = scmp.lt.s32.totalorder %s902_s16, %s902_s16 }
 0x119   :  { %v171_v26 = vadd.f32 %v170_v25, %v169_v24  ;;  %p909_p11 = por %p908_p10, %p907_p9 }
 0x11b   :  { %v172_v27 = vrot.slane %v171_v26, 2  ;;  %p910_p12 = pnand %p909_p11, %p903_p8 }
 0x11d   :  { %v173_v30 = vadd.f32 %v172_v27, %v171_v26 }
 0x11f   :  { %v174_v32 = vrot.slane %v173_v30, 1 }
 0x121   :  { %v175_v33 = vadd.f32 %v174_v32, %v173_v30 }
 0x123   :  { %v176_v34 = vmul.f32 0.0625, %v175_v33 }
 0x125   :  { %v177_v35 = vadd.f32 1e-05, %v176_v34 }
 0x127   :  { %872 = vrsqrt.f32 %v177_v35 }
 0x131   :  { %v873_v36 = vpop.eup %872 }
 0x132   :  { %v179_v37 = vmul.f32 %v873_v36, %v163_v18  ;;  %v180_v38 = vmul.f32 %v873_v36, %v164_v19 }
 0x134   :  { %v181_v41 = vmax.f32 %v179_v37, 0.0  ;;  %v182_v42 = vmax.f32 %v180_v38, 0.0 }
 0x136   :  { %729 = vmatprep.mubr.msk.f32.mxu1 %vm70_vm0, %v181_v41 }
 0x137   :  { %730 = vmatmul.mubr.msk.f32.vlgmr.msra.gmra.mrb[0].mxu1 %vm70_vm0, %v182_v42 }
 0x138   :  { %847 = vmatpush3.bf16.msra.mxu1 %v844_v31 }
 0x139   :  { %849 = vmatprep.subr.bf16.mxu1 %v848_v43 }
 0x13c   :  { %851 = vmatpush3.bf16.msra.mxu1 %v848_v43 }
 0x13d   :  { %853 = vmatprep.subr.bf16.mxu1 %v852_v46 }
 0x140   :  { %855 = vmatpush3.bf16.msra.mxu1 %v852_v46 }
 0x141   :  { %857 = vmatprep.subr.bf16.mxu1 %v856_v49 }
 0x144   :  { %859 = vmatpush3.bf16.msra.mxu1 %v856_v49 }
 0x173   :  { %v764_v51 = vpop.f32.mrb[2].mxu0 }
 0x174   :  { %v442_v52 = vadd.f32 %v764_v51, %v640_v50  ;;  %v436_v53 = vpop.f32.mrb[3].mxu0 }
 0x175   :  { %v437_v54 = vadd.f32 %v640_v50, %v436_v53 }
 0x176   :  { %v446_v55 = vsel %vm70_vm0, %v442_v52, 0.0 }
 0x177   :  { %v445_v56 = vsel %vm70_vm0, %v437_v54, 0.0 }
 0x178   :  { %v447_v57 = vadd.f32 %v446_v55, %v445_v56 }
 0x17a   :  { %v448_v58 = vrot.slane %v447_v57, 4 }
 0x17c   :  { %v449_v59 = vadd.f32 %v448_v58, %v447_v57 }
 0x17e   :  { %v450_v60 = vrot.slane %v449_v59, 2 }
 0x180   :  { %v451_v61 = vadd.f32 %v450_v60, %v449_v59 }
 0x182   :  { %v452_v62 = vrot.slane %v451_v61, 1 }
 0x184   :  { %v453_v63 = vadd.f32 %v452_v62, %v451_v61 }
 0x186   :  { %v454_v0 = vmul.f32 0.0625, %v453_v63 }
 0x188   :  { %v455_v1 = vsub.f32 %v437_v54, %v454_v0  ;;  %v456_v2 = vsub.f32 %v442_v52, %v454_v0 }
 0x18a   :  { %v457_v3 = vmul.f32 %v455_v1, %v455_v1  ;;  %v458_v4 = vmul.f32 %v456_v2, %v456_v2 }
 0x18c   :  { %v459_v5 = vsel %vm70_vm0, %v457_v3, 0.0  ;;  %v460_v6 = vsel %vm70_vm0, %v458_v4, 0.0 }
 0x18d   :  { %v461_v7 = vadd.f32 %v460_v6, %v459_v5 }
 0x18f   :  { %v462_v8 = vrot.slane %v461_v7, 4 }
 0x191   :  { %v463_v9 = vadd.f32 %v462_v8, %v461_v7 }
 0x193   :  { %v464_v10 = vrot.slane %v463_v9, 2 }
 0x195   :  { %v465_v11 = vadd.f32 %v464_v10, %v463_v9 }
 0x197   :  { %v466_v12 = vrot.slane %v465_v11, 1 }
 0x199   :  { %v467_v13 = vadd.f32 %v466_v12, %v465_v11 }
 0x19b   :  { %v468_v14 = vmul.f32 0.0625, %v467_v13 }
 0x19d   :  { %v469_v15 = vadd.f32 1e-05, %v468_v14 }
 0x19f   :  { %874 = vrsqrt.f32 %v469_v15 }
 0x1a9   :  { %v875_v16 = vpop.eup %874 }
 0x1aa   :  { %v471_v17 = vmul.f32 %v875_v16, %v455_v1  ;;  %v472_v18 = vmul.f32 %v875_v16, %v456_v2 }
 0x1ac   :  { %v473_v19 = vmax.f32 %v471_v17, 0.0  ;;  %v474_v20 = vmax.f32 %v472_v18, 0.0 }
 0x1ae   :  { %781 = vmatprep.mubr.msk.f32.mxu1 %vm70_vm0, %v473_v19 }
 0x1af   :  { %782 = vmatmul.mubr.msk.f32.vlgmr.msra.gmra.mrb[2].mxu1 %vm70_vm0, %v474_v20 }
 0x20a   :  { %v731_v22 = vpop.f32.mrb[0].mxu1 }
 0x20b   :  { %v276_v23 = vadd.f32 %v731_v22, %v637_v21  ;;  %v270_v24 = vpop.f32.mrb[1].mxu1 }
 0x20c   :  { %v271_v25 = vadd.f32 %v637_v21, %v270_v24 }
 0x20d   :  { %v280_v26 = vsel %vm70_vm0, %v276_v23, 0.0 }
 0x20e   :  { %v279_v27 = vsel %vm70_vm0, %v271_v25, 0.0 }
 0x20f   :  { %v281_v28 = vadd.f32 %v280_v26, %v279_v27 }
 0x211   :  { %v282_v29 = vrot.slane %v281_v28, 4 }
 0x213   :  { %v283_v30 = vadd.f32 %v282_v29, %v281_v28 }
 0x215   :  { %v284_v31 = vrot.slane %v283_v30, 2 }
 0x217   :  { %v285_v32 = vadd.f32 %v284_v31, %v283_v30 }
 0x219   :  { %v286_v33 = vrot.slane %v285_v32, 1 }
 0x21b   :  { %v287_v34 = vadd.f32 %v286_v33, %v285_v32 }
 0x21d   :  { %v288_v35 = vmul.f32 0.0625, %v287_v34 }
 0x21f   :  { %v289_v36 = vsub.f32 %v271_v25, %v288_v35  ;;  %v290_v37 = vsub.f32 %v276_v23, %v288_v35 }
 0x221   :  { %v291_v38 = vmul.f32 %v289_v36, %v289_v36  ;;  %v292_v39 = vmul.f32 %v290_v37, %v290_v37 }
 0x223   :  { %v293_v40 = vsel %vm70_vm0, %v291_v38, 0.0  ;;  %v294_v41 = vsel %vm70_vm0, %v292_v39, 0.0 }
 0x224   :  { %v295_v42 = vadd.f32 %v294_v41, %v293_v40 }
 0x226   :  { %v296_v43 = vrot.slane %v295_v42, 4 }
 0x228   :  { %v297_v44 = vadd.f32 %v296_v43, %v295_v42 }
 0x22a   :  { %v298_v45 = vrot.slane %v297_v44, 2 }
 0x22c   :  { %v299_v46 = vadd.f32 %v298_v45, %v297_v44 }
 0x22e   :  { %v300_v47 = vrot.slane %v299_v46, 1 }
 0x230   :  { %v301_v48 = vadd.f32 %v300_v47, %v299_v46 }
 0x232   :  { %v302_v49 = vmul.f32 0.0625, %v301_v48 }
 0x234   :  { %v303_v50 = vadd.f32 1e-05, %v302_v49 }
 0x236   :  { %876 = vrsqrt.f32 %v303_v50 }
 0x240   :  { %v877_v51 = vpop.eup %876 }
 0x241   :  { %v305_v52 = vmul.f32 %v877_v51, %v289_v36  ;;  %v306_v53 = vmul.f32 %v877_v51, %v290_v37 }
 0x243   :  { %307 = vst.msk [vmem:[#allocation5] sm:$0xff] %vm70_vm0, %v305_v52  ;;  %308 = vst.msk [vmem:[#allocation5 + $0x8] sm:$0xff] %vm70_vm0, %v306_v53 }
 0x244   :  { %913 = shalt.err (!%p910_p12)
}
 0x245   :  { %s914_s18 = scalar_lea.hbm %s1236_s10, 256 }
 0x246   :  { %p915_p13 = scmp.ne.s32.totalorder %s1236_s10, %s914_s18  ;;  %p918_p0 = scmp.lt.u32.totalorder %s914_s18, %s1236_s10 }
 0x248   :  { %p920_p1 = pnand %p918_p0, %p915_p13 }
 0x24a   :  { %923 = shalt.err (!%p920_p1)
}
 0x24b   :  { %612 = dma.vmem_to_hbm [thread:$0]  %s607_s15, 256, %s1236_s10, [#allocation4], %s953_s27, %s953_s27, %s954_s28  }
 0x24c   :  { %v644_v54 = vld [vmem:[%s1235_s9] ss:$0 sm:$0xff]  ;;  %s959_s9 = smov [#allocation6]  }
 0x24d   :  { %s618_s10 = sshll.u32 %s959_s9, 4  ;;  %s619_s10 = int_to_ptr.vmem [resolvable:$true] %s618_s10 }
 0x24e   :  { %s924_s1 = scalar_lea.vmem %s619_s10, 256  ;;  %p929_p3 = scmp.lt.s32.totalorder %s619_s10, %s619_s10 }
 0x24f   :  { %p925_p2 = scmp.ne.s32.totalorder %s619_s10, %s924_s1  ;;  %p930_p4 = scmp.lt.s32.totalorder %s924_s1, %s924_s1 }
 0x251   :  { %p931_p5 = por %p930_p4, %p929_p3 }
 0x253   :  { %p932_p6 = pnand %p931_p5, %p925_p2 }
 0x282   :  { %v783_v55 = vpop.f32.mrb[2].mxu1 }
 0x283   :  { %v568_v56 = vadd.f32 %v783_v55, %v644_v54  ;;  %v562_v57 = vpop.f32.mrb[3].mxu1 }
 0x284   :  { %v563_v58 = vadd.f32 %v644_v54, %v562_v57 }
 0x285   :  { %v572_v59 = vsel %vm70_vm0, %v568_v56, 0.0 }
 0x286   :  { %v571_v60 = vsel %vm70_vm0, %v563_v58, 0.0 }
 0x287   :  { %v573_v61 = vadd.f32 %v572_v59, %v571_v60 }
 0x289   :  { %v574_v62 = vrot.slane %v573_v61, 4 }
 0x28b   :  { %v575_v63 = vadd.f32 %v574_v62, %v573_v61 }
 0x28d   :  { %v576_v0 = vrot.slane %v575_v63, 2 }
 0x28f   :  { %v577_v1 = vadd.f32 %v576_v0, %v575_v63 }
 0x291   :  { %v578_v2 = vrot.slane %v577_v1, 1 }
 0x293   :  { %v579_v3 = vadd.f32 %v578_v2, %v577_v1 }
 0x295   :  { %v580_v4 = vmul.f32 0.0625, %v579_v3 }
 0x297   :  { %v581_v5 = vsub.f32 %v563_v58, %v580_v4  ;;  %v582_v6 = vsub.f32 %v568_v56, %v580_v4 }
 0x299   :  { %v583_v7 = vmul.f32 %v581_v5, %v581_v5  ;;  %v584_v8 = vmul.f32 %v582_v6, %v582_v6 }
 0x29b   :  { %v585_v9 = vsel %vm70_vm0, %v583_v7, 0.0  ;;  %v586_v10 = vsel %vm70_vm0, %v584_v8, 0.0 }
 0x29c   :  { %v587_v11 = vadd.f32 %v586_v10, %v585_v9 }
 0x29e   :  { %v588_v12 = vrot.slane %v587_v11, 4 }
 0x2a0   :  { %v589_v13 = vadd.f32 %v588_v12, %v587_v11 }
 0x2a2   :  { %v590_v14 = vrot.slane %v589_v13, 2 }
 0x2a4   :  { %v591_v15 = vadd.f32 %v590_v14, %v589_v13 }
 0x2a6   :  { %v592_v16 = vrot.slane %v591_v15, 1 }
 0x2a8   :  { %v593_v17 = vadd.f32 %v592_v16, %v591_v15 }
 0x2aa   :  { %v594_v18 = vmul.f32 0.0625, %v593_v17 }
 0x2ac   :  { %v595_v19 = vadd.f32 1e-05, %v594_v18 }
 0x2ae   :  { %878 = vrsqrt.f32 %v595_v19 }
 0x2b8   :  { %v879_v20 = vpop.eup %878 }
 0x2b9   :  { %v597_v21 = vmul.f32 %v879_v20, %v581_v5  ;;  %v598_v22 = vmul.f32 %v879_v20, %v582_v6 }
 0x2bb   :  { %599 = vst.msk [vmem:[#allocation6] sm:$0xff] %vm70_vm0, %v597_v21  ;;  %600 = vst.msk [vmem:[#allocation6 + $0x8] sm:$0xff] %vm70_vm0, %v598_v22 }
 0x2bc   :  { %935 = shalt.err (!%p932_p6)
}
 0x2bd   :  { %s936_s25 = scalar_lea.hbm %s1237_s11, 256 }
 0x2be   :  { %p937_p7 = scmp.ne.s32.totalorder %s1237_s11, %s936_s25  ;;  %p940_p8 = scmp.lt.u32.totalorder %s936_s25, %s1237_s11 }
 0x2c0   :  { %p942_p9 = pnand %p940_p8, %p937_p7 }
 0x2c2   :  { %945 = shalt.err (!%p942_p9)
}
 0x2c3   :  { %624 = dma.vmem_to_hbm [thread:$0]  %s619_s10, 256, %s1237_s11, [#allocation7], %s953_s27, %s953_s27, %s954_s28  }
 0x2c4   :  { %948 = dma.done.wait [#allocation4], 256  }
 0x2c5   :  { %949 = vsyncadd [#allocation4], 4294967040 }
 0x2c6   :  { %950 = dma.done.wait [#allocation7], 256  }
 0x2c7   :  { %951 = vsyncadd [#allocation7], 4294967040 }
 0x2c8   :  { %631 = vsyncpa [#allocation3], 1 }
 0x2c9   :  { %632 = vsyncpa [#allocation4], 1 }
 0x2ca   :  { %633 = vsyncpa [#allocation7], 1 }

</bundles_post_ra>
